<compile_context>
chip_gen: v6e
topology: v6e:2x2x1
jax: 0.10.0
libtpu: 0.0.40
codegen_flags: <defaults>
</compile_context>

<pallas_src>
import math
import jax
import jax.numpy as jnp
from jax.experimental import pallas as pl
from jax.experimental.pallas import tpu as pltpu


def attn_kernel(h_ref, e_ref, hv_ref, ev_ref, o_ref):
    # h_ref:  (N, H)  hidden[:, b, :]            (batch dim squeezed by BlockSpec)
    # e_ref:  (T, H)  encoder_outputs[:, b, :]
    # hv_ref: (1, H)  W[:, :H]^T @ v   (rank-1 fold of Linear + v-dot)
    # ev_ref: (1, H)  W[:, H:]^T @ v
    # o_ref:  (N, T)  softmax_t(energy) for this batch element
    f32 = jnp.float32
    h = h_ref[...].astype(f32)          # upcast after load: bf16-in-HBM, f32 compute
    e = e_ref[...].astype(f32)
    hv = hv_ref[...].astype(f32)        # (1, H)
    ev = ev_ref[...].astype(f32)        # (1, H)

    # Rank-1 scores: VPU multiply + lane reduce (no MXU needed at small/medium H).
    sh = jnp.sum(h * hv, axis=-1, keepdims=True)     # (N, 1)
    se = jnp.sum(e * ev, axis=-1, keepdims=True)     # (T, 1)

    # energy[n, t] = <h[n], hv> + <e[t], ev>   (bias.v dropped: constant over T, cancels)
    energy = sh + se.T                               # (N, T)

    # Numerically-stable softmax over T (last axis); exact normalization.
    m = jnp.max(energy, axis=-1, keepdims=True)
    p = jnp.exp(energy - m)
    denom = jnp.sum(p, axis=-1, keepdims=True)
    o_ref[...] = (p / denom).astype(o_ref.dtype)


@jax.jit
def attn_forward(hidden, encoder_outputs, W, bias, v):
    """hidden: (N,B,H), encoder_outputs: (T,B,H), W: (H,2H), bias/v: (H,) -> (B,N,T) f32.

    hidden / encoder_outputs may be f32 or bf16 (bf16 halves the dominant HBM traffic on
    v6e/v7x); the kernel computes in f32 either way.
    """
    N, B, H = hidden.shape
    T = encoder_outputs.shape[0]
    f32 = jnp.float32

    # Batch-major layout plumbing: per-batch blocks become full (rows, H) tiles.
    h_bm = jnp.transpose(hidden, (1, 0, 2))            # (B, N, H)
    e_bm = jnp.transpose(encoder_outputs, (1, 0, 2))   # (B, T, H)

    W = jnp.asarray(W, f32)
    v = jnp.asarray(v, f32)

    # Rank-1 folds of Linear(2H->H) + v-dot (tiny H-length matvecs, done once).
    hv = (W[:, :H].T @ v).reshape(1, H)                # (1, H)
    ev = (W[:, H:].T @ v).reshape(1, H)                # (1, H)
    # bias @ v is NOT passed: it is constant along the softmax axis and cancels exactly.

    # vmem_limit sized from the actual per-step tiles (double-buffered) + headroom.
    bytes_per_step = (
        2 * N * H * h_bm.dtype.itemsize        # hidden block, x2 buffers
        + 2 * T * H * e_bm.dtype.itemsize      # encoder block, x2 buffers
        + 2 * N * T * 4                        # output block (f32), x2 buffers
        + 2 * 2 * H * 4                        # hv / ev (resident)
    )
    vmem_limit = int(min(max(4 * bytes_per_step, 4 * 1024 * 1024), 64 * 1024 * 1024))

    return pl.pallas_call(
        attn_kernel,
        out_shape=jax.ShapeDtypeStruct((B, N, T), f32),
        grid=(B,),
        in_specs=[
            pl.BlockSpec((None, N, H), lambda b: (b, 0, 0)),   # hidden[b]   -> (N, H)
            pl.BlockSpec((None, T, H), lambda b: (b, 0, 0)),   # encoder[b]  -> (T, H)
            pl.BlockSpec((1, H), lambda b: (0, 0)),            # hv (resident across grid)
            pl.BlockSpec((1, H), lambda b: (0, 0)),            # ev (resident across grid)
        ],
        out_specs=pl.BlockSpec((None, N, T), lambda b: (b, 0, 0)),
        compiler_params=pltpu.CompilerParams(
            dimension_semantics=("parallel",),   # shard batch across v7x's 2 TensorCores
            vmem_limit_bytes=vmem_limit,
        ),
    )(h_bm, e_bm, hv, ev)


def attn_reference(hidden, encoder_outputs, W, bias, v):
    """Pure-JAX transcription of the PyTorch forward for validation."""
    N, B, H = hidden.shape
    T = encoder_outputs.shape[0]
    Hrep = jnp.broadcast_to(hidden[None], (T, N, B, H))             # hidden.repeat(T,1,1,1)
    Erep = jnp.broadcast_to(encoder_outputs[:, None], (T, N, B, H))
    cat = jnp.concatenate([Hrep, Erep], axis=3)                     # (T, N, B, 2H)
    energy = cat @ W.T + bias                                       # Linear(2H -> H)
    e = energy @ v                                                  # (T, N, B)
    e = jnp.transpose(e, (2, 1, 0))                                 # (B, N, T)
    return jax.nn.softmax(e, axis=-1)


if __name__ == "__main__":
    # Small shapes consistent with the module: N=seq, T=max_len, B=batch, H=hidden.
    N, T, B, H = 8, 8, 2, 32

    key = jax.random.PRNGKey(0)
    k_h, k_e, k_w, k_b, k_v = jax.random.split(key, 5)

    hidden = jax.random.normal(k_h, (N, B, H), dtype=jnp.float32)
    encoder_outputs = jax.random.normal(k_e, (T, B, H), dtype=jnp.float32)

    # Deterministic parameter init mirroring nn.Linear(2H, H) and the v parameter.
    lin_bound = 1.0 / math.sqrt(2 * H)
    W = jax.random.uniform(k_w, (H, 2 * H), minval=-lin_bound, maxval=lin_bound,
                           dtype=jnp.float32)
    bias = jax.random.uniform(k_b, (H,), minval=-lin_bound, maxval=lin_bound,
                              dtype=jnp.float32)
    v_bound = 1.0 / math.sqrt(H)
    v = jax.random.uniform(k_v, (H,), minval=-v_bound, maxval=v_bound,
                           dtype=jnp.float32)

    ref = attn_reference(hidden, encoder_outputs, W, bias, v)

    # f32 activation path: tight tolerance (exact softmax normalization in-kernel).
    out = jax.block_until_ready(attn_forward(hidden, encoder_outputs, W, bias, v))
    assert out.shape == (B, N, T)
    assert jnp.allclose(out, ref, atol=1e-4, rtol=1e-4), "f32 path mismatch vs reference"

    # Bandwidth mode (v6e/v7x feedback): bf16 activation streams, f32 in-kernel compute.
    # Looser tolerance only because the inputs themselves were rounded to bf16.
    out_bf16 = jax.block_until_ready(
        attn_forward(hidden.astype(jnp.bfloat16),
                     encoder_outputs.astype(jnp.bfloat16), W, bias, v))
    assert out_bf16.shape == (B, N, T)
    assert jnp.allclose(out_bf16, ref, atol=5e-2, rtol=5e-2), "bf16 path mismatch vs reference"

    print("KERNEL_OK")
</pallas_src>

<mosaic_0001>
module attributes {stable_mosaic.version = 11 : i64} {
  func.func @attn_kernel(%arg0: i32, %arg1: memref<1x8x32xf32, #tpu.memory_space<vmem>>, %arg2: memref<1x8x32xf32, #tpu.memory_space<vmem>>, %arg3: memref<1x32xf32, #tpu.memory_space<vmem>>, %arg4: memref<1x32xf32, #tpu.memory_space<vmem>>, %arg5: memref<1x8x8xf32, #tpu.memory_space<vmem>>) attributes {dimension_semantics = [#tpu.dimension_semantics<parallel>], iteration_bounds = array<i64: 2>, scalar_prefetch = 0 : i64, scratch_operands = 0 : i64, tpu.core_type = #tpu.core_type<tc>, window_params = [{transform_indices = @transform_0, window_bounds = array<i64: 1, 8, 32>}, {transform_indices = @transform_1, window_bounds = array<i64: 1, 8, 32>}, {pipeline_mode = #tpu.pipeline_mode<synchronous>, transform_indices = @transform_2, window_bounds = array<i64: 1, 32>}, {pipeline_mode = #tpu.pipeline_mode<synchronous>, transform_indices = @transform_3, window_bounds = array<i64: 1, 32>}, {transform_indices = @transform_4, window_bounds = array<i64: 1, 8, 8>}]} {
    %c0 = arith.constant 0 : index
    %c0_0 = arith.constant 0 : index
    %c0_1 = arith.constant 0 : index
    %0 = vector.load %arg1[%c0, %c0_0, %c0_1] : memref<1x8x32xf32, #tpu.memory_space<vmem>>, vector<1x8x32xf32>
    %1 = vector.shape_cast %0 : vector<1x8x32xf32> to vector<8x32xf32>
    %c0_2 = arith.constant 0 : index
    %c0_3 = arith.constant 0 : index
    %c0_4 = arith.constant 0 : index
    %2 = vector.load %arg2[%c0_2, %c0_3, %c0_4] : memref<1x8x32xf32, #tpu.memory_space<vmem>>, vector<1x8x32xf32>
    %3 = vector.shape_cast %2 : vector<1x8x32xf32> to vector<8x32xf32>
    %c0_5 = arith.constant 0 : index
    %c0_6 = arith.constant 0 : index
    %4 = vector.load %arg3[%c0_5, %c0_6] : memref<1x32xf32, #tpu.memory_space<vmem>>, vector<1x32xf32>
    %c0_7 = arith.constant 0 : index
    %c0_8 = arith.constant 0 : index
    %5 = vector.load %arg4[%c0_7, %c0_8] : memref<1x32xf32, #tpu.memory_space<vmem>>, vector<1x32xf32>
    %6 = vector.broadcast %4 : vector<1x32xf32> to vector<8x32xf32>
    %7 = arith.mulf %1, %6 : vector<8x32xf32>
    %cst = arith.constant dense<0.000000e+00> : vector<8xf32>
    %8 = vector.multi_reduction <add>, %7, %cst [1] : vector<8x32xf32> to vector<8xf32>
    %9 = vector.shape_cast %8 : vector<8xf32> to vector<8x1xf32>
    %10 = vector.broadcast %5 : vector<1x32xf32> to vector<8x32xf32>
    %11 = arith.mulf %3, %10 : vector<8x32xf32>
    %cst_9 = arith.constant dense<0.000000e+00> : vector<8xf32>
    %12 = vector.multi_reduction <add>, %11, %cst_9 [1] : vector<8x32xf32> to vector<8xf32>
    %13 = vector.shape_cast %12 : vector<8xf32> to vector<8x1xf32>
    %14 = tpu.transpose %13, [1, 0] : vector<8x1xf32> -> vector<1x8xf32>
    %15 = vector.broadcast %9 : vector<8x1xf32> to vector<8x8xf32>
    %16 = vector.broadcast %14 : vector<1x8xf32> to vector<8x8xf32>
    %17 = arith.addf %15, %16 : vector<8x8xf32>
    %cst_10 = arith.constant dense<0xFF800000> : vector<8xf32>
    %18 = vector.multi_reduction <maximumf>, %17, %cst_10 [1] : vector<8x8xf32> to vector<8xf32>
    %19 = vector.shape_cast %18 : vector<8xf32> to vector<8x1xf32>
    %20 = vector.broadcast %19 : vector<8x1xf32> to vector<8x8xf32>
    %21 = arith.subf %17, %20 : vector<8x8xf32>
    %22 = math.exp %21 : vector<8x8xf32>
    %cst_11 = arith.constant dense<0.000000e+00> : vector<8xf32>
    %23 = vector.multi_reduction <add>, %22, %cst_11 [1] : vector<8x8xf32> to vector<8xf32>
    %24 = vector.shape_cast %23 : vector<8xf32> to vector<8x1xf32>
    %25 = vector.broadcast %24 : vector<8x1xf32> to vector<8x8xf32>
    %26 = arith.divf %22, %25 : vector<8x8xf32>
    %c0_12 = arith.constant 0 : index
    %c0_13 = arith.constant 0 : index
    %c0_14 = arith.constant 0 : index
    %27 = vector.load %arg5[%c0_12, %c0_13, %c0_14] : memref<1x8x8xf32, #tpu.memory_space<vmem>>, vector<1x8x8xf32>
    %28 = vector.shape_cast %27 : vector<1x8x8xf32> to vector<8x8xf32>
    %29 = vector.shape_cast %26 : vector<8x8xf32> to vector<1x8x8xf32>
    tpu.vector_store %arg5[%c0_12, %c0_13, %c0_14], %29 {strides = array<i32>} : memref<1x8x8xf32, #tpu.memory_space<vmem>>, vector<1x8x8xf32>,
    return
  }
  func.func @transform_0(%arg0: i32) -> (i32, i32, i32) {
    %c0_i32 = arith.constant 0 : i32
    %c0_i32_0 = arith.constant 0 : i32
    %c0_i32_1 = arith.constant 0 : i32
    return %arg0, %c0_i32, %c0_i32_0 : i32, i32, i32
  }
  func.func @transform_1(%arg0: i32) -> (i32, i32, i32) {
    %c0_i32 = arith.constant 0 : i32
    %c0_i32_0 = arith.constant 0 : i32
    %c0_i32_1 = arith.constant 0 : i32
    return %arg0, %c0_i32, %c0_i32_0 : i32, i32, i32
  }
  func.func @transform_2(%arg0: i32) -> (i32, i32) {
    %c0_i32 = arith.constant 0 : i32
    %c0_i32_0 = arith.constant 0 : i32
    %c0_i32_1 = arith.constant 0 : i32
    return %c0_i32, %c0_i32_0 : i32, i32
  }
  func.func @transform_3(%arg0: i32) -> (i32, i32) {
    %c0_i32 = arith.constant 0 : i32
    %c0_i32_0 = arith.constant 0 : i32
    %c0_i32_1 = arith.constant 0 : i32
    return %c0_i32, %c0_i32_0 : i32, i32
  }
  func.func @transform_4(%arg0: i32) -> (i32, i32, i32) {
    %c0_i32 = arith.constant 0 : i32
    %c0_i32_0 = arith.constant 0 : i32
    %c0_i32_1 = arith.constant 0 : i32
    return %arg0, %c0_i32, %c0_i32_0 : i32, i32, i32
  }
}

</mosaic_0001>

<bundles_post_ra>
// kernel: attn_forward.1
= control target key start
LH: loop header
LB: loop body
LE: loop exit
PB: predicated region body
PF: predicated region fallthrough
CT: control target
= control target key end

     0   :  { %9 = vsyncpa [#allocation3], 0  ;;  %s614_s0 = inlined_call_operand.vmem [shape: f32[2,8,32], index: 0, kind: input, shape index: {}]   ;;  %s615_s1 = inlined_call_operand.vmem [shape: f32[2,8,32], index: 1, kind: input, shape index: {}]   ;;  %s616_s2 = inlined_call_operand.vmem [shape: f32[1,32], index: 2, kind: input, shape index: {}]   ;;  %s617_s3 = inlined_call_operand.vmem [shape: f32[1,32], index: 3, kind: input, shape index: {}]   ;;  %s618_s4 = inlined_call_operand.hbm [shape: f32[2,8,8], index: 4, kind: output, shape index: {}]  }
   0x1   :  { %11 = vsyncpa [#allocation3 + $0x1], 0  ;;  %s515_s15 = smov 0   ;;  %s517_s16 = smov 0  }
   0x2   :  { %s519_s17 = smov 0   ;;  %s521_s18 = smov 0  }
   0x3 LB: > { %s536_s19 = sadd.s32 4294967295, %s487_s18   ;;  %s370_s20 = sadd.s32 4294967294, %s487_s18   ;;  %s487_s18 = sphi %s521_s18, %s624_s18   ;;  %s483_s17 = sphi %s519_s17, %s623_s17   ;;  %s479_s16 = sphi %s517_s16, %s622_s16   ;;  %s475_s15 = sphi %s515_s15, %s621_s15  }
   0x4   : > { %s540_s21 = sadd.s32 1, %s487_s18   ;;  %s118_s22 = sadd.s32 1, %s483_s17 }
   0x5   : > { %s115_s23 = ssub.s32 %s487_s18, %s540_s21  ;;  %p128_p0 = scmp.ne.s32.totalorder %s483_s17, %s479_s16 }
   0x6   : > { %p116_p1 = scmp.eq.s32.totalorder %s115_s23, 0  ;;  %p129_p2 = scmp.eq.s32.totalorder %s536_s19, 1 }
   0x7   : > { %p134_p3 = scmp.ne.s32.totalorder %s479_s16, %s475_s15  ;;  %p135_p4 = scmp.eq.s32.totalorder %s370_s20, 1 }
   0x8   : > { %s551_s24 = scalar_select %p116_p1, %s483_s17, %s118_s22  }
   0x9   : > { %p553_p5 = por %p129_p2, %p128_p0  ;;  %p557_p6 = por %p135_p4, %p134_p3 }
   0xa   : > { %p373_p7 = scmp.ge.s32.totalorder %s487_s18, 1  ;;  %p173_p8 = scmp.lt.s32.totalorder %s487_s18, 3 }
   0xc   : > { %p174_p9 = pnand %p373_p7, %p173_p8 }
   0xd   : > { %p202_p10 = scmp.lt.s32.totalorder (!%p174_p9), %s536_s19, 1  ;;  %s199_s13 = sand.u32 (!%p174_p9), 1, %s479_s16  }
   0xe   : > { %177 = sbr.rel (%p174_p9) target bundleno = 619 (0x26b), region = 36  ;;  %s374_s14 = sshll.u32 (!%p174_p9), %s199_s13, 3 }
   0xf   : > { %s380_s20 = sshll.u32 (!%p174_p9), %s536_s19, 7  ;;  %s201_s22 = scalar_lea.vmem (!%p174_p9), [#allocation2], %s374_s14 }
  0x10   : > { %s299_s23 = sshll.u32 (!%p174_p9), %s201_s22, 4  ;;  %s297_s29 = scalar_lea.hbm (!%p174_p9), %s618_s4, %s380_s20  ;;  %s300_s23 = int_to_ptr.vmem [resolvable:$true] %s299_s23 }
  0x11   : > { %s286_s30 = scalar_lea.sflag (!%p174_p9), [#allocation3], %s199_s13  ;;  %s427_s5 = scalar_lea.vmem (!%p174_p9), %s300_s23, 128 }
  0x12   : > { %p428_p11 = scmp.ne.s32.totalorder (!%p174_p9), %s300_s23, %s427_s5  ;;  %s489_s6 = smov (!%p174_p9), [#allocation2]  }
  0x13   : > { %s203_s27 = scalar_select %p202_p10, %s536_s19, 1  ;;  %v378_v0 = vld [vmem:[%s617_s3] ss:$0 sm:$0xff]  ;;  %vm221_vm0 = vcmask 261120   ;;  %v267_v9 = vlaneseq  ;;  %vm272_vm1 = vcmask 64512  }
  0x14   : > { %v377_v1 = vld [vmem:[%s616_s2] ss:$0 sm:$0xff]  ;;  %p429_p12 = pnand %p428_p11, %p553_p5  ;;  %s431_s7 = sshll.u32 %s489_s6, 4  ;;  %s432_s7 = int_to_ptr.vmem [resolvable:$false] %s431_s7 }
  0x15   : > { %s375_s28 = sshll.u32 %s203_s27, 3  ;;  %v268_v10 = vshrl.u32 %v267_v9, 7  ;;  %s433_s19 = scalar_lea.vmem %s432_s7, 256 }
  0x16   : > { %s209_s9 = scalar_lea.vmem %s615_s1, %s375_s28  ;;  %s205_s12 = scalar_lea.vmem %s614_s0, %s375_s28 }
  0x17   : > { %v211_v2 = vld [vmem:[%s209_s9] sm:$0xff]  ;;  %v269_v11 = vsub.s32 0, %v268_v10  ;;  %p430_p13 = pneg %p429_p12  ;;  %p434_p0 = scmp.lt.s32.totalorder %s300_s23, %s432_s7 }
  0x18   : > { %v210_v3 = vld [vmem:[%s205_s12] sm:$0xff]  ;;  %v231_v4 = vmul.f32 %v378_v0, %v211_v2  ;;  %p435_p1 = scmp.lt.s32.totalorder %s433_s19, %s427_s5 }
  0x19   : > { %v220_v5 = vmul.f32 %v377_v1, %v210_v3 }
  0x1a   : > { %v232_v6 = vsel %vm221_vm0, %v231_v4, 0.0  ;;  %p436_p2 = por %p435_p1, %p434_p0 }
  0x1b   : > { %233 = vadd.xlane.f32.xlu0 %v232_v6  ;;  %v222_v7 = vsel %vm221_vm0, %v220_v5, 0.0 }
  0x1c   : > { %p437_p3 = pnand %p436_p2, %p430_p13 }
  0x1f   : > { %223 = vadd.xlane.f32.xlu0 %v222_v7 }
  0xa4   : > { %v234_v8 = vpop.xlane.xlu0 %233 }
  0xa5   : > { %235 = vxpose.xlu1.b32.start.end [1/1] (short) (narrow) %v234_v8, 8 }
  0xa8   : > { %v224_v13 = vpop.xlane.xlu0 %223 }
 0x121   : > { %v251_v12 = vpop.trf.xlu1 }
 0x122   : > { %v270_v14 = vrot.slane %v251_v12, %v269_v11 }
 0x124   : > { %v271_v15 = vadd.f32 %v270_v14, %v224_v13 }
 0x126   : > { %v273_v16 = vsel %vm272_vm1, %v271_v15, -inf }
 0x127   : > { %274 = vmax.xlane.f32.xlu1 %v273_v16 }
 0x1b0   : > { %v275_v17 = vpop.xlane.xlu1 %274 }
 0x1b1   : > { %v276_v18 = vsub.f32 %v271_v15, %v275_v17 }
 0x1b3   : > { %v277_v19 = vmul.f32 1.442695, %v276_v18 }
 0x1b5   : > { %423 = vpow2.f32 %v277_v19 }
 0x1c2   : > { %v424_v20 = vpop.eup %423 }
 0x1c3   : > { %v279_v21 = vsel %vm272_vm1, %v424_v20, 0.0 }
 0x1c4   : > { %280 = vadd.xlane.f32.xlu0 %v279_v21 }
 0x24d   : > { %v281_v22 = vpop.xlane.xlu0 %280 }
 0x24e   : > { %425 = vrcp.f32 %v281_v22 }
 0x25b   : > { %v426_v23 = vpop.eup %425 }
 0x25c   : > { %v283_v24 = vmul.f32 %v426_v23, %v424_v20 }
 0x25e   : > { %284 = vst.msk [vmem:[%s201_s22] sm:$0xff] %vm272_vm1, %v283_v24 }
 0x25f   : > { %440 = shalt.err (!%p437_p3)
}
 0x260   : > { %s441_s8 = scalar_lea.hbm %s297_s29, 128  ;;  %s445_s11 = scalar_lea.hbm %s618_s4, 256 }
 0x261   : > { %p442_p4 = scmp.ne.s32.totalorder %s297_s29, %s441_s8  ;;  %p446_p9 = scmp.lt.s32.totalorder %s297_s29, %s618_s4 }
 0x262   : > { %p447_p10 = scmp.lt.s32.totalorder %s445_s11, %s441_s8 }
 0x263   : > { %p443_p7 = pnand %p442_p4, %p553_p5 }
 0x264   : > { %p448_p11 = por %p447_p10, %p446_p9 }
 0x265   : > { %p444_p8 = pneg %p443_p7 }
 0x267   : > { %p449_p12 = pnand %p448_p11, %p444_p8 }
 0x269   : > { %452 = shalt.err (!%p449_p12)
}
 0x26a   : > { %383 = dma.vmem_to_hbm [thread:$0]  (%p553_p5), %s300_s23, 128, %s297_s29, %s286_s30  }
 0x26b PF: > { %p389_p13 = scmp.ge.s32.totalorder %s487_s18, 2  ;;  %s311_s14 = sand.u32 1, %s475_s15  }
 0x26c   : > { %s312_s20 = scalar_lea.sflag [#allocation3], %s311_s14 }
 0x26d   : > { %p386_p0 = pnand %p389_p13, %p557_p6 }
 0x26f   : > { %p387_p1 = pneg %p386_p0 }
 0x271   : > { %470 = dma.done.wait (%p387_p1), %s312_s20, 128  }
 0x272   : > { %472 = vsyncadd (%p387_p1), %s312_s20, 4294967168  ;;  %p14_p2 = scmp.ge.s32.totalorder %s540_s21, 4   ;;  %s621_s15 = smov %s479_s16 }
 0x273   : > { %s622_s16 = smov %s483_s17  ;;  %s623_s17 = smov %s551_s24 }
 0x274   : > { %s624_s18 = smov %s540_s21  ;;  %16 = sbr.rel (!%p14_p2) target bundleno = 3 (0x3), region = 74 }
 0x279   :  { %317 = vsyncpa [#allocation3], 1 }
 0x27a   :  { %319 = vsyncpa [#allocation3 + $0x1], 1 }

</bundles_post_ra>
